<compile_context>
chip_gen: v5e
topology: v5e:2x2
jax: 0.10.0
libtpu: 0.0.40
codegen_flags: <defaults>
</compile_context>

<pallas_src>
import functools

import jax
import jax.numpy as jnp
from jax.experimental import pallas as pl
from jax.experimental.pallas import tpu as pltpu


def _round_up(x, m):
    return (x + m - 1) // m * m


def _cdiv(a, b):
    return (a + b - 1) // b


def _fused_mlp_kernel(x_ref, w0_ref, b0_ref, wr_ref, br_ref, o_ref, act_ref, *,
                      num_layers, h_pad, out_pad, sigmoid_output):
    # x_ref:   (TILE_N, D_in)  f32   input rows at natural feature width
    # w0_ref:  (D_in, P0)      bf16  layer-0 weight (P0 = H_pad, or Out_pad if L==1)
    # b0_ref:  (1, P0)         f32
    # wr_ref:  (L-1, H_pad, W) bf16  remaining layers (last layer uses [:, :out_pad])
    # br_ref:  (L-1, 1, W)     f32
    # o_ref:   (TILE_N, Out_pad) f32
    # act_ref: (TILE_N, H_pad) f32   VMEM activation scratch

    # Layer 0: feed directly from x_ref (no initial VMEM->VMEM copy).
    y = jnp.dot(x_ref[...].astype(jnp.bfloat16), w0_ref[...],
                preferred_element_type=jnp.float32) + b0_ref[...]
    if num_layers == 1:
        if sigmoid_output:
            y = jax.nn.sigmoid(y)
        o_ref[...] = y.astype(o_ref.dtype)
        return
    act_ref[...] = jnp.maximum(y, 0.0)            # f32 ReLU, stays in VMEM

    n_rest = num_layers - 1
    for l in range(n_rest):                       # statically unrolled
        last = l == n_rest - 1
        width = out_pad if last else h_pad        # last layer: narrow output
        w = wr_ref[l, :, :width]                  # bf16, tile-aligned slice
        b = br_ref[l, :, :width]                  # f32
        y = jnp.dot(act_ref[...].astype(jnp.bfloat16), w,
                    preferred_element_type=jnp.float32) + b
        if not last:
            act_ref[...] = jnp.maximum(y, 0.0)
        else:
            if sigmoid_output:
                y = jax.nn.sigmoid(y)
            o_ref[...] = y.astype(o_ref.dtype)


def _fused_mlp(x2d, w0, b0, wr, br, *, num_layers, h_pad, out_pad,
               sigmoid_output, tile_n):
    n_pad, d_in = x2d.shape
    grid = (n_pad // tile_n,)

    kernel = functools.partial(
        _fused_mlp_kernel, num_layers=num_layers, h_pad=h_pad, out_pad=out_pad,
        sigmoid_output=sigmoid_output)

    # Right-sized VMEM budget: assume double-buffered weights (conservative),
    # double-buffered x/out tiles and the activation scratch; cap at 48 MiB so
    # there is headroom even on v7x's 64 MiB VMEM.
    w_bytes = (w0.size + wr.size) * 2 + (b0.size + br.size) * 4
    tile_bytes = (2 * tile_n * d_in * 4          # x tiles (double-buffered)
                  + 2 * tile_n * out_pad * 4     # out tiles (double-buffered)
                  + tile_n * h_pad * 4)          # activation scratch
    vmem_limit = int(min(48 << 20, 2 * w_bytes + tile_bytes + (8 << 20)))
    # NOTE: for very large hidden dims (2*w_bytes near the cap) a
    # weight-streaming variant (extra grid axis over layers) would be needed;
    # not required for SAM-scale shapes.

    def build(single_buffer_weights):
        def const_spec(shape):
            idx_map = lambda i: (0,) * len(shape)
            if single_buffer_weights:
                # grid-invariant block: double-buffering is pure VMEM waste
                return pl.BlockSpec(shape, idx_map,
                                    pipeline_mode=pl.Buffered(1))
            return pl.BlockSpec(shape, idx_map)

        return pl.pallas_call(
            kernel,
            out_shape=jax.ShapeDtypeStruct((n_pad, out_pad), jnp.float32),
            grid_spec=pltpu.PrefetchScalarGridSpec(
                num_scalar_prefetch=0,
                grid=grid,
                in_specs=[
                    pl.BlockSpec((tile_n, d_in), lambda i: (i, 0)),
                    const_spec(w0.shape),
                    const_spec(b0.shape),
                    const_spec(wr.shape),
                    const_spec(br.shape),
                ],
                out_specs=pl.BlockSpec((tile_n, out_pad), lambda i: (i, 0)),
                scratch_shapes=[pltpu.VMEM((tile_n, h_pad), jnp.float32)],
            ),
            compiler_params=pltpu.CompilerParams(
                dimension_semantics=("parallel",),
                vmem_limit_bytes=vmem_limit,
            ),
        )

    try:
        out = build(True)(x2d, w0, b0, wr, br)
        return jax.block_until_ready(out)
    except Exception:
        # pipeline_mode / Buffered(1) not supported by this JAX build ->
        # default double-buffered specs (same result, a bit more VMEM).
        return build(False)(x2d, w0, b0, wr, br)


class MLP:
    """JAX/Pallas port of segment_anything MLP (single fused TPU kernel)."""

    def __init__(self, input_dim, hidden_dim, output_dim, num_layers,
                 sigmoid_output=False, key=None):
        self.num_layers = num_layers
        self.sigmoid_output = sigmoid_output
        self.input_dim = input_dim
        self.output_dim = output_dim

        h = [hidden_dim] * (num_layers - 1)
        dims = list(zip([input_dim] + h, h + [output_dim]))

        key = jax.random.PRNGKey(42) if key is None else key
        self.weights, self.biases = [], []
        for n_in, n_out in dims:
            key, kw, kb = jax.random.split(key, 3)
            # roughly torch Linear's uniform(-1/sqrt(n_in), 1/sqrt(n_in)) init
            bound = 1.0 / float(n_in) ** 0.5
            self.weights.append(
                jax.random.uniform(kw, (n_in, n_out), jnp.float32, -bound, bound))
            self.biases.append(
                jax.random.uniform(kb, (n_out,), jnp.float32, -bound, bound))

        # Per-layer lane padding (multiples of 128). Layer 0 keeps its natural
        # input width; hidden layers are H_pad wide; the last layer is only
        # Out_pad wide. Padded lanes are zero and stay zero through ReLUs.
        out_pad = _round_up(output_dim, 128)
        if num_layers > 1:
            h_pad = _round_up(hidden_dim, 128)
            first_out_dim, first_out_pad = hidden_dim, h_pad
        else:
            h_pad = out_pad                       # no hidden layers
            first_out_dim, first_out_pad = output_dim, out_pad
        w2 = max(h_pad, out_pad)
        n_rest = max(num_layers - 1, 1)
        self.h_pad, self.out_pad = h_pad, out_pad

        w0 = jnp.zeros((input_dim, first_out_pad), jnp.bfloat16)
        w0 = w0.at[:, :first_out_dim].set(self.weights[0].astype(jnp.bfloat16))
        b0 = jnp.zeros((1, first_out_pad), jnp.float32)
        b0 = b0.at[0, :first_out_dim].set(self.biases[0])

        wr = jnp.zeros((n_rest, h_pad, w2), jnp.bfloat16)
        br = jnp.zeros((n_rest, 1, w2), jnp.float32)
        for idx in range(1, num_layers):
            n_in, n_out = dims[idx]
            wr = wr.at[idx - 1, :n_in, :n_out].set(
                self.weights[idx].astype(jnp.bfloat16))
            br = br.at[idx - 1, 0, :n_out].set(self.biases[idx])
        self.w0, self.b0, self.wr, self.br = w0, b0, wr, br

    def __call__(self, x):
        orig_shape = x.shape
        x2d = x.reshape(-1, orig_shape[-1]).astype(jnp.float32)
        n = x2d.shape[0]

        # Row tiling: up to 1024 rows per tile, an even (>=2 when possible)
        # number of grid steps for the 2 v7x TensorCores, minimal row padding.
        n8 = _round_up(max(n, 8), 8)
        num_tiles = max(2, _cdiv(n8, 1024))
        num_tiles += num_tiles % 2
        tile_n = _round_up(_cdiv(n8, num_tiles), 8)
        num_tiles = _cdiv(n8, tile_n)
        n_pad = num_tiles * tile_n

        if n_pad != n:                            # rows only, natural lane width
            x2d = jnp.pad(x2d, ((0, n_pad - n), (0, 0)))

        y_pad = _fused_mlp(
            x2d, self.w0, self.b0, self.wr, self.br,
            num_layers=self.num_layers, h_pad=self.h_pad, out_pad=self.out_pad,
            sigmoid_output=self.sigmoid_output, tile_n=tile_n)
        out = y_pad[:n, :self.output_dim]
        return out.reshape(*orig_shape[:-1], self.output_dim)


def _reference_mlp(mlp, x):
    # pure-JAX f32 reference for correctness check
    x2d = x.reshape(-1, x.shape[-1]).astype(jnp.float32)
    for i, (w, b) in enumerate(zip(mlp.weights, mlp.biases)):
        y = x2d @ w + b
        x2d = jnp.maximum(y, 0.0) if i < mlp.num_layers - 1 else y
    if mlp.sigmoid_output:
        x2d = jax.nn.sigmoid(x2d)
    return x2d.reshape(*x.shape[:-1], x2d.shape[-1])


if __name__ == "__main__":
    # small shapes consistent with the module's forward: (batch, seq, input_dim)
    batch, seq = 2, 8
    input_dim, hidden_dim, output_dim, num_layers = 32, 32, 16, 3

    x = jax.random.normal(jax.random.PRNGKey(0), (batch, seq, input_dim),
                          jnp.float32)
    mlp = MLP(input_dim, hidden_dim, output_dim, num_layers,
              sigmoid_output=True, key=jax.random.PRNGKey(1))

    out = jax.block_until_ready(mlp(x))
    ref = _reference_mlp(mlp, x)
    assert out.shape == (batch, seq, output_dim), out.shape
    # bf16 MXU operands vs f32 reference -> relaxed tolerance
    assert jnp.allclose(out, ref, atol=3e-2, rtol=3e-2), "mismatch vs reference"

    # larger N: exercises the 2-step parallel row grid (tile_n=600, no padding)
    x2 = jax.random.normal(jax.random.PRNGKey(2), (3, 400, input_dim),
                           jnp.float32)
    out2 = jax.block_until_ready(mlp(x2))
    ref2 = _reference_mlp(mlp, x2)
    assert out2.shape == (3, 400, output_dim), out2.shape
    assert jnp.allclose(out2, ref2, atol=3e-2, rtol=3e-2), "mismatch (tiled)"

    # 2-layer, no-sigmoid variant (exercises the last-layer out_pad slicing)
    mlp2 = MLP(64, 128, 32, 2, sigmoid_output=False, key=jax.random.PRNGKey(3))
    x3 = jax.random.normal(jax.random.PRNGKey(4), (4, 16, 64), jnp.float32)
    out3 = jax.block_until_ready(mlp2(x3))
    ref3 = _reference_mlp(mlp2, x3)
    assert out3.shape == (4, 16, 32), out3.shape
    assert jnp.allclose(out3, ref3, atol=3e-2, rtol=3e-2), "mismatch (mlp2)"

    print("KERNEL_OK")
</pallas_src>

<mosaic_0001>
module attributes {stable_mosaic.version = 11 : i64} {
  func.func @_fused_mlp_kernel(%arg0: i32, %arg1: memref<8x32xf32, #tpu.memory_space<vmem>>, %arg2: memref<32x128xbf16, #tpu.memory_space<vmem>>, %arg3: memref<1x128xf32, #tpu.memory_space<vmem>>, %arg4: memref<2x128x128xbf16, #tpu.memory_space<vmem>>, %arg5: memref<2x1x128xf32, #tpu.memory_space<vmem>>, %arg6: memref<8x128xf32, #tpu.memory_space<vmem>>, %arg7: memref<8x128xf32, #tpu.memory_space<vmem>>) attributes {dimension_semantics = [#tpu.dimension_semantics<parallel>], iteration_bounds = array<i64: 2>, scalar_prefetch = 0 : i64, scratch_operands = 1 : i64, tpu.core_type = #tpu.core_type<tc>, window_params = [{transform_indices = @transform_0, window_bounds = array<i64: 8, 32>}, {pipeline_mode = #tpu.pipeline_mode<synchronous>, transform_indices = @transform_1, window_bounds = array<i64: 32, 128>}, {pipeline_mode = #tpu.pipeline_mode<synchronous>, transform_indices = @transform_2, window_bounds = array<i64: 1, 128>}, {pipeline_mode = #tpu.pipeline_mode<synchronous>, transform_indices = @transform_3, window_bounds = array<i64: 2, 128, 128>}, {pipeline_mode = #tpu.pipeline_mode<synchronous>, transform_indices = @transform_4, window_bounds = array<i64: 2, 1, 128>}, {transform_indices = @transform_5, window_bounds = array<i64: 8, 128>}]} {
    %c0 = arith.constant 0 : index
    %c0_0 = arith.constant 0 : index
    %0 = vector.load %arg1[%c0, %c0_0] : memref<8x32xf32, #tpu.memory_space<vmem>>, vector<8x32xf32>
    %1 = arith.truncf %0 : vector<8x32xf32> to vector<8x32xbf16>
    %c0_1 = arith.constant 0 : index
    %c0_2 = arith.constant 0 : index
    %2 = vector.load %arg2[%c0_1, %c0_2] : memref<32x128xbf16, #tpu.memory_space<vmem>>, vector<32x128xbf16>
    %cst = arith.constant dense<0.000000e+00> : vector<8x128xf32>
    %3 = tpu.matmul %1, %2, %cst {dimension_numbers = #tpu.dot_dimension_numbers<[1], [0], [0], [1], [0, 0, 1, 1], [], []>} : vector<8x32xbf16>, vector<32x128xbf16>, vector<8x128xf32> -> vector<8x128xf32>
    %c0_3 = arith.constant 0 : index
    %c0_4 = arith.constant 0 : index
    %4 = vector.load %arg3[%c0_3, %c0_4] : memref<1x128xf32, #tpu.memory_space<vmem>>, vector<1x128xf32>
    %5 = vector.broadcast %4 : vector<1x128xf32> to vector<8x128xf32>
    %6 = arith.addf %3, %5 : vector<8x128xf32>
    %cst_5 = arith.constant 0.000000e+00 : f32
    %7 = vector.broadcast %cst_5 : f32 to vector<8x128xf32>
    %8 = arith.maximumf %6, %7 : vector<8x128xf32>
    %c0_6 = arith.constant 0 : index
    %c0_7 = arith.constant 0 : index
    %9 = vector.load %arg7[%c0_6, %c0_7] : memref<8x128xf32, #tpu.memory_space<vmem>>, vector<8x128xf32>
    tpu.vector_store %arg7[%c0_6, %c0_7], %8 {strides = array<i32>} : memref<8x128xf32, #tpu.memory_space<vmem>>, vector<8x128xf32>,
    %c0_8 = arith.constant 0 : index
    %c0_9 = arith.constant 0 : index
    %c0_10 = arith.constant 0 : index
    %10 = vector.load %arg4[%c0_8, %c0_9, %c0_10] : memref<2x128x128xbf16, #tpu.memory_space<vmem>>, vector<1x128x128xbf16>
    %11 = vector.shape_cast %10 : vector<1x128x128xbf16> to vector<128x128xbf16>
    %c0_11 = arith.constant 0 : index
    %c0_12 = arith.constant 0 : index
    %c0_13 = arith.constant 0 : index
    %12 = vector.load %arg5[%c0_11, %c0_12, %c0_13] : memref<2x1x128xf32, #tpu.memory_space<vmem>>, vector<1x1x128xf32>
    %13 = vector.shape_cast %12 : vector<1x1x128xf32> to vector<1x128xf32>
    %c0_14 = arith.constant 0 : index
    %c0_15 = arith.constant 0 : index
    %14 = vector.load %arg7[%c0_14, %c0_15] : memref<8x128xf32, #tpu.memory_space<vmem>>, vector<8x128xf32>
    %15 = arith.truncf %14 : vector<8x128xf32> to vector<8x128xbf16>
    %cst_16 = arith.constant dense<0.000000e+00> : vector<8x128xf32>
    %16 = tpu.matmul %15, %11, %cst_16 {dimension_numbers = #tpu.dot_dimension_numbers<[1], [0], [0], [1], [0, 0, 1, 1], [], []>} : vector<8x128xbf16>, vector<128x128xbf16>, vector<8x128xf32> -> vector<8x128xf32>
    %17 = vector.broadcast %13 : vector<1x128xf32> to vector<8x128xf32>
    %18 = arith.addf %16, %17 : vector<8x128xf32>
    %cst_17 = arith.constant 0.000000e+00 : f32
    %19 = vector.broadcast %cst_17 : f32 to vector<8x128xf32>
    %20 = arith.maximumf %18, %19 : vector<8x128xf32>
    %c0_18 = arith.constant 0 : index
    %c0_19 = arith.constant 0 : index
    %21 = vector.load %arg7[%c0_18, %c0_19] : memref<8x128xf32, #tpu.memory_space<vmem>>, vector<8x128xf32>
    tpu.vector_store %arg7[%c0_18, %c0_19], %20 {strides = array<i32>} : memref<8x128xf32, #tpu.memory_space<vmem>>, vector<8x128xf32>,
    %c1 = arith.constant 1 : index
    %c0_20 = arith.constant 0 : index
    %c0_21 = arith.constant 0 : index
    %22 = vector.load %arg4[%c1, %c0_20, %c0_21] : memref<2x128x128xbf16, #tpu.memory_space<vmem>>, vector<1x128x128xbf16>
    %23 = vector.shape_cast %22 : vector<1x128x128xbf16> to vector<128x128xbf16>
    %c1_22 = arith.constant 1 : index
    %c0_23 = arith.constant 0 : index
    %c0_24 = arith.constant 0 : index
    %24 = vector.load %arg5[%c1_22, %c0_23, %c0_24] : memref<2x1x128xf32, #tpu.memory_space<vmem>>, vector<1x1x128xf32>
    %25 = vector.shape_cast %24 : vector<1x1x128xf32> to vector<1x128xf32>
    %c0_25 = arith.constant 0 : index
    %c0_26 = arith.constant 0 : index
    %26 = vector.load %arg7[%c0_25, %c0_26] : memref<8x128xf32, #tpu.memory_space<vmem>>, vector<8x128xf32>
    %27 = arith.truncf %26 : vector<8x128xf32> to vector<8x128xbf16>
    %cst_27 = arith.constant dense<0.000000e+00> : vector<8x128xf32>
    %28 = tpu.matmul %27, %23, %cst_27 {dimension_numbers = #tpu.dot_dimension_numbers<[1], [0], [0], [1], [0, 0, 1, 1], [], []>} : vector<8x128xbf16>, vector<128x128xbf16>, vector<8x128xf32> -> vector<8x128xf32>
    %29 = vector.broadcast %25 : vector<1x128xf32> to vector<8x128xf32>
    %30 = arith.addf %28, %29 : vector<8x128xf32>
    %31 = arith.negf %30 : vector<8x128xf32>
    %32 = math.exp %31 : vector<8x128xf32>
    %cst_28 = arith.constant 1.000000e+00 : f32
    %33 = vector.broadcast %cst_28 : f32 to vector<8x128xf32>
    %34 = arith.addf %33, %32 : vector<8x128xf32>
    %35 = arith.divf %33, %34 : vector<8x128xf32>
    %c0_29 = arith.constant 0 : index
    %c0_30 = arith.constant 0 : index
    %36 = vector.load %arg6[%c0_29, %c0_30] : memref<8x128xf32, #tpu.memory_space<vmem>>, vector<8x128xf32>
    tpu.vector_store %arg6[%c0_29, %c0_30], %35 {strides = array<i32>} : memref<8x128xf32, #tpu.memory_space<vmem>>, vector<8x128xf32>,
    return
  }
  func.func @transform_0(%arg0: i32) -> (i32, i32) {
    %c0_i32 = arith.constant 0 : i32
    %c0_i32_0 = arith.constant 0 : i32
    return %arg0, %c0_i32 : i32, i32
  }
  func.func @transform_1(%arg0: i32) -> (i32, i32) {
    %c0_i32 = arith.constant 0 : i32
    %c0_i32_0 = arith.constant 0 : i32
    %c0_i32_1 = arith.constant 0 : i32
    return %c0_i32, %c0_i32_0 : i32, i32
  }
  func.func @transform_2(%arg0: i32) -> (i32, i32) {
    %c0_i32 = arith.constant 0 : i32
    %c0_i32_0 = arith.constant 0 : i32
    %c0_i32_1 = arith.constant 0 : i32
    return %c0_i32, %c0_i32_0 : i32, i32
  }
  func.func @transform_3(%arg0: i32) -> (i32, i32, i32) {
    %c0_i32 = arith.constant 0 : i32
    %c0_i32_0 = arith.constant 0 : i32
    %c0_i32_1 = arith.constant 0 : i32
    %c0_i32_2 = arith.constant 0 : i32
    return %c0_i32, %c0_i32_0, %c0_i32_1 : i32, i32, i32
  }
  func.func @transform_4(%arg0: i32) -> (i32, i32, i32) {
    %c0_i32 = arith.constant 0 : i32
    %c0_i32_0 = arith.constant 0 : i32
    %c0_i32_1 = arith.constant 0 : i32
    %c0_i32_2 = arith.constant 0 : i32
    return %c0_i32, %c0_i32_0, %c0_i32_1 : i32, i32, i32
  }
  func.func @transform_5(%arg0: i32) -> (i32, i32) {
    %c0_i32 = arith.constant 0 : i32
    %c0_i32_0 = arith.constant 0 : i32
    return %arg0, %c0_i32 : i32, i32
  }
}

module attributes {stable_mosaic.version = 11 : i64} {
  func.func @_fused_mlp_kernel(%arg0: i32, %arg1: memref<8x32xf32, #tpu.memory_space<vmem>>, %arg2: memref<32x128xbf16, #tpu.memory_space<vmem>>, %arg3: memref<1x128xf32, #tpu.memory_space<vmem>>, %arg4: memref<2x128x128xbf16, #tpu.memory_space<vmem>>, %arg5: memref<2x1x128xf32, #tpu.memory_space<vmem>>, %arg6: memref<8x128xf32, #tpu.memory_space<vmem>>, %arg7: memref<8x128xf32, #tpu.memory_space<vmem>>) attributes {dimension_semantics = [#tpu.dimension_semantics<parallel>], iteration_bounds = array<i64: 2>, scalar_prefetch = 0 : i64, scratch_operands = 1 : i64, tpu.core_type = #tpu.core_type<tc>, window_params = [{transform_indices = @transform_0, window_bounds = array<i64: 8, 32>}, {pipeline_mode = #tpu.pipeline_mode<synchronous>, transform_indices = @transform_1, window_bounds = array<i64: 32, 128>}, {pipeline_mode = #tpu.pipeline_mode<synchronous>, transform_indices = @transform_2, window_bounds = array<i64: 1, 128>}, {pipeline_mode = #tpu.pipeline_mode<synchronous>, transform_indices = @transform_3, window_bounds = array<i64: 2, 128, 128>}, {pipeline_mode = #tpu.pipeline_mode<synchronous>, transform_indices = @transform_4, window_bounds = array<i64: 2, 1, 128>}, {transform_indices = @transform_5, window_bounds = array<i64: 8, 128>}]} {
    %c0 = arith.constant 0 : index
    %c0_0 = arith.constant 0 : index
    %0 = vector.load %arg1[%c0, %c0_0] : memref<8x32xf32, #tpu.memory_space<vmem>>, vector<8x32xf32>
    %1 = arith.truncf %0 : vector<8x32xf32> to vector<8x32xbf16>
    %c0_1 = arith.constant 0 : index
    %c0_2 = arith.constant 0 : index
    %2 = vector.load %arg2[%c0_1, %c0_2] : memref<32x128xbf16, #tpu.memory_space<vmem>>, vector<32x128xbf16>
    %cst = arith.constant dense<0.000000e+00> : vector<8x128xf32>
    %3 = tpu.matmul %1, %2, %cst {dimension_numbers = #tpu.dot_dimension_numbers<[1], [0], [0], [1], [0, 0, 1, 1], [], []>} : vector<8x32xbf16>, vector<32x128xbf16>, vector<8x128xf32> -> vector<8x128xf32>
    %c0_3 = arith.constant 0 : index
    %c0_4 = arith.constant 0 : index
    %4 = vector.load %arg3[%c0_3, %c0_4] : memref<1x128xf32, #tpu.memory_space<vmem>>, vector<1x128xf32>
    %5 = vector.broadcast %4 : vector<1x128xf32> to vector<8x128xf32>
    %6 = arith.addf %3, %5 : vector<8x128xf32>
    %cst_5 = arith.constant 0.000000e+00 : f32
    %7 = vector.broadcast %cst_5 : f32 to vector<8x128xf32>
    %8 = arith.maximumf %6, %7 : vector<8x128xf32>
    %c0_6 = arith.constant 0 : index
    %c0_7 = arith.constant 0 : index
    %9 = vector.load %arg7[%c0_6, %c0_7] : memref<8x128xf32, #tpu.memory_space<vmem>>, vector<8x128xf32>
    tpu.vector_store %arg7[%c0_6, %c0_7], %8 {strides = array<i32>} : memref<8x128xf32, #tpu.memory_space<vmem>>, vector<8x128xf32>,
    %c0_8 = arith.constant 0 : index
    %c0_9 = arith.constant 0 : index
    %c0_10 = arith.constant 0 : index
    %10 = vector.load %arg4[%c0_8, %c0_9, %c0_10] : memref<2x128x128xbf16, #tpu.memory_space<vmem>>, vector<1x128x128xbf16>
    %11 = vector.shape_cast %10 : vector<1x128x128xbf16> to vector<128x128xbf16>
    %c0_11 = arith.constant 0 : index
    %c0_12 = arith.constant 0 : index
    %c0_13 = arith.constant 0 : index
    %12 = vector.load %arg5[%c0_11, %c0_12, %c0_13] : memref<2x1x128xf32, #tpu.memory_space<vmem>>, vector<1x1x128xf32>
    %13 = vector.shape_cast %12 : vector<1x1x128xf32> to vector<1x128xf32>
    %c0_14 = arith.constant 0 : index
    %c0_15 = arith.constant 0 : index
    %14 = vector.load %arg7[%c0_14, %c0_15] : memref<8x128xf32, #tpu.memory_space<vmem>>, vector<8x128xf32>
    %15 = arith.truncf %14 : vector<8x128xf32> to vector<8x128xbf16>
    %cst_16 = arith.constant dense<0.000000e+00> : vector<8x128xf32>
    %16 = tpu.matmul %15, %11, %cst_16 {dimension_numbers = #tpu.dot_dimension_numbers<[1], [0], [0], [1], [0, 0, 1, 1], [], []>} : vector<8x128xbf16>, vector<128x128xbf16>, vector<8x128xf32> -> vector<8x128xf32>
    %17 = vector.broadcast %13 : vector<1x128xf32> to vector<8x128xf32>
    %18 = arith.addf %16, %17 : vector<8x128xf32>
    %cst_17 = arith.constant 0.000000e+00 : f32
    %19 = vector.broadcast %cst_17 : f32 to vector<8x128xf32>
    %20 = arith.maximumf %18, %19 : vector<8x128xf32>
    %c0_18 = arith.constant 0 : index
    %c0_19 = arith.constant 0 : index
    %21 = vector.load %arg7[%c0_18, %c0_19] : memref<8x128xf32, #tpu.memory_space<vmem>>, vector<8x128xf32>
    tpu.vector_store %arg7[%c0_18, %c0_19], %20 {strides = array<i32>} : memref<8x128xf32, #tpu.memory_space<vmem>>, vector<8x128xf32>,
    %c1 = arith.constant 1 : index
    %c0_20 = arith.constant 0 : index
    %c0_21 = arith.constant 0 : index
    %22 = vector.load %arg4[%c1, %c0_20, %c0_21] : memref<2x128x128xbf16, #tpu.memory_space<vmem>>, vector<1x128x128xbf16>
    %23 = vector.shape_cast %22 : vector<1x128x128xbf16> to vector<128x128xbf16>
    %c1_22 = arith.constant 1 : index
    %c0_23 = arith.constant 0 : index
    %c0_24 = arith.constant 0 : index
    %24 = vector.load %arg5[%c1_22, %c0_23, %c0_24] : memref<2x1x128xf32, #tpu.memory_space<vmem>>, vector<1x1x128xf32>
    %25 = vector.shape_cast %24 : vector<1x1x128xf32> to vector<1x128xf32>
    %c0_25 = arith.constant 0 : index
    %c0_26 = arith.constant 0 : index
    %26 = vector.load %arg7[%c0_25, %c0_26] : memref<8x128xf32, #tpu.memory_space<vmem>>, vector<8x128xf32>
    %27 = arith.truncf %26 : vector<8x128xf32> to vector<8x128xbf16>
    %cst_27 = arith.constant dense<0.000000e+00> : vector<8x128xf32>
    %28 = tpu.matmul %27, %23, %cst_27 {dimension_numbers = #tpu.dot_dimension_numbers<[1], [0], [0], [1], [0, 0, 1, 1], [], []>} : vector<8x128xbf16>, vector<128x128xbf16>, vector<8x128xf32> -> vector<8x128xf32>
    %29 = vector.broadcast %25 : vector<1x128xf32> to vector<8x128xf32>
    %30 = arith.addf %28, %29 : vector<8x128xf32>
    %31 = arith.negf %30 : vector<8x128xf32>
    %32 = math.exp %31 : vector<8x128xf32>
    %cst_28 = arith.constant 1.000000e+00 : f32
    %33 = vector.broadcast %cst_28 : f32 to vector<8x128xf32>
    %34 = arith.addf %33, %32 : vector<8x128xf32>
    %35 = arith.divf %33, %34 : vector<8x128xf32>
    %c0_29 = arith.constant 0 : index
    %c0_30 = arith.constant 0 : index
    %36 = vector.load %arg6[%c0_29, %c0_30] : memref<8x128xf32, #tpu.memory_space<vmem>>, vector<8x128xf32>
    tpu.vector_store %arg6[%c0_29, %c0_30], %35 {strides = array<i32>} : memref<8x128xf32, #tpu.memory_space<vmem>>, vector<8x128xf32>,
    return
  }
  func.func @transform_0(%arg0: i32) -> (i32, i32) {
    %c0_i32 = arith.constant 0 : i32
    %c0_i32_0 = arith.constant 0 : i32
    return %arg0, %c0_i32 : i32, i32
  }
  func.func @transform_1(%arg0: i32) -> (i32, i32) {
    %c0_i32 = arith.constant 0 : i32
    %c0_i32_0 = arith.constant 0 : i32
    %c0_i32_1 = arith.constant 0 : i32
    return %c0_i32, %c0_i32_0 : i32, i32
  }
  func.func @transform_2(%arg0: i32) -> (i32, i32) {
    %c0_i32 = arith.constant 0 : i32
    %c0_i32_0 = arith.constant 0 : i32
    %c0_i32_1 = arith.constant 0 : i32
    return %c0_i32, %c0_i32_0 : i32, i32
  }
  func.func @transform_3(%arg0: i32) -> (i32, i32, i32) {
    %c0_i32 = arith.constant 0 : i32
    %c0_i32_0 = arith.constant 0 : i32
    %c0_i32_1 = arith.constant 0 : i32
    %c0_i32_2 = arith.constant 0 : i32
    return %c0_i32, %c0_i32_0, %c0_i32_1 : i32, i32, i32
  }
  func.func @transform_4(%arg0: i32) -> (i32, i32, i32) {
    %c0_i32 = arith.constant 0 : i32
    %c0_i32_0 = arith.constant 0 : i32
    %c0_i32_1 = arith.constant 0 : i32
    %c0_i32_2 = arith.constant 0 : i32
    return %c0_i32, %c0_i32_0, %c0_i32_1 : i32, i32, i32
  }
  func.func @transform_5(%arg0: i32) -> (i32, i32) {
    %c0_i32 = arith.constant 0 : i32
    %c0_i32_0 = arith.constant 0 : i32
    return %arg0, %c0_i32 : i32, i32
  }
}

</mosaic_0001>

<bundles_post_ra>
// kernel: tpu_custom_call.1
= control target key start
LH: loop header
LB: loop body
LE: loop exit
PB: predicated region body
PF: predicated region fallthrough
CT: control target
= control target key end

     0   :  { %10 = vsyncpa [#allocation4], 0  ;;  %s1151_s0 = inlined_call_operand.hbm [shape: f32[16,32], index: 0, kind: input, shape index: {}]   ;;  %s1152_s1 = inlined_call_operand.hbm [shape: bf16[32,128], index: 1, kind: input, shape index: {}]   ;;  %s1153_s2 = inlined_call_operand.vmem [shape: f32[1,128], index: 2, kind: input, shape index: {}]   ;;  %s1154_s3 = inlined_call_operand.hbm [shape: bf16[2,128,128], index: 3, kind: input, shape index: {}]   ;;  %s1155_s4 = inlined_call_operand.vmem [shape: f32[2,1,128], index: 4, kind: input, shape index: {}]   ;;  %s1156_s5 = inlined_call_operand.hbm [shape: f32[16,128], index: 5, kind: output, shape index: {}]  }
   0x1   :  { %12 = vsyncpa [#allocation4 + $0x1], 0 }
   0x2   :  { %13 = vsyncpa [#allocation7], 0 }
   0x3   :  { %14 = vsyncpa [#allocation5], 0 }
   0x4   :  { %16 = vsyncpa [#allocation5 + $0x1], 0  ;;  %s993_s18 = smov 0   ;;  %s995_s19 = smov 0  }
   0x5   :  { %s997_s20 = smov 0   ;;  %s999_s21 = smov 0  }
   0x6 LB: > { %s174_s24 = sshll.u32 %s1152_s1, 4  ;;  %s1017_s25 = sadd.s32 4294967295, %s957_s21   ;;  %s957_s21 = sphi %s999_s21, %s1167_s21   ;;  %s953_s20 = sphi %s997_s20, %s1166_s20   ;;  %s949_s19 = sphi %s995_s19, %s1165_s19   ;;  %s945_s18 = sphi %s993_s18, %s1164_s18   ;;  %s175_s24 = int_to_ptr.hbm [resolvable:$true] %s174_s24 }
   0x7   : > { %p613_p0 = scmp.ge.s32.totalorder %s957_s21, 1  ;;  %p43_p1 = scmp.eq.s32.totalorder %s1017_s25, 0 }
   0x8   : > { %p163_p2 = scmp.lt.s32.totalorder %s957_s21, 3  ;;  %s959_s27 = smov [#allocation6]  }
   0x9   : > { %s176_s28 = sshll.u32 %s959_s27, 4  ;;  %s191_s6 = sshll.u32 %s1154_s3, 4  ;;  %s177_s28 = int_to_ptr.vmem [resolvable:$true] %s176_s28  ;;  %s192_s6 = int_to_ptr.hbm [resolvable:$true] %s191_s6 }
   0xa   : > { %p1022_p3 = pnand %p613_p0, %p163_p2  ;;  %s960_s7 = smov [#allocation8]  }
   0xb   : > { %s193_s8 = sshll.u32 %s960_s7, 4  ;;  %s961_s9 = smov 64   ;;  %s194_s8 = int_to_ptr.vmem [resolvable:$true] %s193_s8 }
   0xc   : > { %p733_p4 = pneg %p1022_p3  ;;  %s962_s10 = smov 4  }
   0xd   : > { %s612_s11 = sadd.s32 4294967294, %s957_s21   ;;  %s1036_s12 = sadd.s32 1, %s957_s21  }
   0xe   : > { %p734_p6 = pnand %p733_p4, %p43_p1  ;;  %s26_s13 = ssub.s32 %s957_s21, %s1036_s12 }
   0xf   : > { %s29_s14 = sadd.s32 1, %s953_s20  ;;  %p27_p7 = scmp.eq.s32.totalorder %s26_s13, 0 }
  0x10   : > { %736 = dma.hbm_to_vmem [thread:$0]  (!%p734_p6), %s175_s24, 256, %s177_s28, [#allocation7], %s961_s9, %s961_s9, %s962_s10  }
  0x11   : > { %739 = dma.hbm_to_vmem [thread:$0]  (!%p734_p6), %s192_s6, 2048, %s194_s8, [#allocation7], %s961_s9, %s961_s9, %s962_s10  }
  0x12   : > { %p36_p8 = scmp.ne.s32.totalorder %s953_s20, %s949_s19  ;;  %p37_p9 = scmp.eq.s32.totalorder %s957_s21, 0 }
  0x13   : > { %p42_p10 = scmp.ne.s32.totalorder %s949_s19, %s945_s18  ;;  %p150_p13 = scmp.eq.s32.totalorder %s1017_s25, 1 }
  0x14   : > { %s1047_s15 = scalar_select %p27_p7, %s953_s20, %s29_s14  }
  0x15   : > { %p1049_p11 = por %p37_p9, %p36_p8  ;;  %p1055_p12 = por %p43_p1, %p42_p10 }
  0x16   : > { %p156_p0 = scmp.eq.s32.totalorder %s612_s11, 1  ;;  %p750_p2 = scmp.lt.s32.totalorder %s957_s21, 2 }
  0x17   : > { %s210_s22 = sand.u32 1, %s953_s20   ;;  %p1062_p4 = por %p150_p13, %p36_p8 }
  0x18   : > { %p1066_p6 = por %p156_p0, %p42_p10  ;;  %s617_s27 = sshll.u32 %s210_s22, 3 }
  0x19   : > { %s618_s28 = sshll.u32 %s957_s21, 3  ;;  %s214_s7 = scalar_lea.vmem [#allocation3], %s617_s27 }
  0x1a   : > { %s218_s6 = scalar_lea.hbm %s1151_s0, %s618_s28  ;;  %s222_s8 = sshll.u32 %s214_s7, 4  ;;  %s223_s8 = int_to_ptr.vmem [resolvable:$true] %s222_s8 }
  0x1b   : > { %s220_s9 = sshll.u32 %s218_s6, 4  ;;  %p1076_p7 = pnand %p750_p2, %p1049_p11  ;;  %s221_s9 = int_to_ptr.hbm [resolvable:$true] %s220_s9 }
  0x1c   : > { %s211_s11 = scalar_lea.sflag [#allocation4], %s210_s22  ;;  %s857_s13 = sshra.s32 %s221_s9, 4  ;;  %s858_s13 = int_to_ptr.hbm [resolvable:$true] %s857_s13 }
  0x1d   : > { %s859_s14 = scalar_lea.hbm %s858_s13, 8  ;;  %p861_p9 = pneg %p1076_p7 }
  0x1e   : > { %p860_p8 = scmp.ne.s32.totalorder %s858_s13, %s859_s14  ;;  %s864_s29 = scalar_lea.hbm %s1151_s0, 16 }
  0x1f   : > { %p865_p11 = scmp.lt.s32.totalorder %s858_s13, %s1151_s0  ;;  %p866_p0 = scmp.lt.s32.totalorder %s864_s29, %s859_s14 }
  0x20   : > { %p862_p10 = pnand %p861_p9, %p860_p8 }
  0x21   : > { %p867_p2 = por %p866_p0, %p865_p11 }
  0x22   : > { %p863_p13 = pneg %p862_p10 }
  0x24   : > { %p868_p5 = pnand %p867_p2, %p863_p13 }
  0x26   : > { %871 = shalt.err (!%p868_p5)
}
  0x27   : > { %743 = dma.hbm_to_vmem [thread:$0]  (!%p1076_p7), %s221_s9, 128, %s223_s8, %s211_s11  }
  0x28   : > { %231 = sbr.rel (%p1022_p3) target bundleno = 485 (0x1e5), region = 40  ;;  %s1093_s22 = sand.u32 (!%p1022_p3), 1, %s949_s19  }
  0x29   : > { %s620_s6 = sshll.u32 (!%p1022_p3), %s1093_s22, 3  ;;  %s234_s7 = scalar_lea.sflag (!%p1022_p3), [#allocation4], %s1093_s22 }
  0x2a   : > { %s237_s13 = scalar_lea.vmem (!%p1022_p3), [#allocation3], %s620_s6 }
  0x2d   : > { %932 = dma.done.wait (%p1055_p12), %s234_s7, 128  }
  0x2e   : > { %934 = vsyncadd (%p1055_p12), %s234_s7, 4294967168 }
  0x2f   : > { %936 = dma.done.wait (%p43_p1), [#allocation7], 2304  }
  0x30   : > { %938 = vsyncadd (%p43_p1), [#allocation7], 4294964992  ;;  %v704_v0 = vld [vmem:[#allocation6 + $0x8] sm:$0xff]  ;;  %v703_v2 = vld [vmem:[#allocation6] sm:$0xff]  ;;  %vm298_vm0 = vcmask 261120   ;;  %s700_s14 = sshll.u32 %s1017_s25, 3 }
  0x31   : > { %v712_v1 = vld [vmem:[#allocation8 + $0x38] sm:$0xff]  ;;  %308 = vmatpush.bf16.msra.mxu0 %v704_v0  ;;  %v276_v3 = vld [vmem:[%s237_s13] sm:$0xff]  ;;  %v711_v4 = vld [vmem:[#allocation8 + $0x30] sm:$0xff]  ;;  %s518_s29 = scalar_lea.hbm %s1156_s5, %s700_s14  ;;  %s274_s30 = scalar_lea.vmem [#allocation9], %s620_s6 }
  0x32   : > { %387 = vmatpush.bf16.msra.mxu1 %v712_v1  ;;  %v277_v5 = vpack.c.bf16 %v276_v3, %v276_v3  ;;  %v710_v6 = vld [vmem:[#allocation8 + $0x28] sm:$0xff]  ;;  %v709_v7 = vld [vmem:[#allocation8 + $0x20] sm:$0xff]  ;;  %v708_v8 = vld [vmem:[#allocation8 + $0x18] sm:$0xff]  ;;  %s520_s16 = sshll.u32 %s274_s30, 4  ;;  %s522_s7 = sshll.u32 %s518_s29, 4  ;;  %s521_s16 = int_to_ptr.vmem [resolvable:$true] %s520_s16  ;;  %s523_s7 = int_to_ptr.hbm [resolvable:$true] %s522_s7 }
  0x33   : > { %v707_v9 = vld [vmem:[#allocation8 + $0x10] sm:$0xff]  ;;  %v706_v10 = vld [vmem:[#allocation8 + $0x8] sm:$0xff]  ;;  %v705_v11 = vld [vmem:[#allocation8] sm:$0xff]  ;;  %s508_s25 = scalar_lea.sflag [#allocation5], %s1093_s22  ;;  %s901_s13 = sshra.s32 %s523_s7, 4  ;;  %s902_s13 = int_to_ptr.hbm [resolvable:$true] %s901_s13 }
  0x34   : > { %v720_v12 = vld [vmem:[#allocation8 + $0x78] sm:$0xff]  ;;  %v719_v13 = vld [vmem:[#allocation8 + $0x70] sm:$0xff]  ;;  %v718_v14 = vld [vmem:[#allocation8 + $0x68] sm:$0xff]  ;;  %s903_s26 = scalar_lea.hbm %s902_s13, 8  ;;  %s907_s8 = scalar_lea.hbm %s1156_s5, 16 }
  0x35   : > { %309 = vmatpush.bf16.msra.mxu0 %v703_v2  ;;  %474 = vmatpush.bf16.msra.mxu2 %v720_v12  ;;  %v717_v15 = vld [vmem:[#allocation8 + $0x60] sm:$0xff]  ;;  %v716_v16 = vld [vmem:[#allocation8 + $0x58] sm:$0xff]  ;;  %v715_v17 = vld [vmem:[#allocation8 + $0x50] sm:$0xff]  ;;  %p904_p1 = scmp.ne.s32.totalorder %s902_s13, %s903_s26  ;;  %p908_p12 = scmp.lt.s32.totalorder %s902_s13, %s1156_s5 }
  0x36   : > { %388 = vmatpush.bf16.msra.mxu1 %v711_v4  ;;  %v790_v18 = vld [vmem:[%s1153_s2] ss:$0 sm:$0xff]  ;;  %v714_v24 = vld [vmem:[#allocation8 + $0x48] sm:$0xff]  ;;  %v792_v32 = vld [vmem:[%s1155_s4 + $0x1] ss:$0 sm:$0xff]  ;;  %p909_p7 = scmp.lt.s32.totalorder %s907_s8, %s903_s26 }
  0x37   : > { %v713_v25 = vld [vmem:[#allocation8 + $0x40] sm:$0xff]  ;;  %p905_p3 = pnand %p904_p1, %p1062_p4 }
  0x38   : > { %632 = vmatmul.msk.bf16.vlgmr.msra.gmra.mxu0 %vm298_vm0, %v277_v5  ;;  %v791_v26 = vld [vmem:[%s1155_s4] ss:$0 sm:$0xff]  ;;  %p910_p8 = por %p909_p7, %p908_p12 }
  0x39   : > { %475 = vmatpush.bf16.msra.mxu2 %v719_v13  ;;  %p906_p5 = pneg %p905_p3 }
  0x3a   : > { %389 = vmatpush.bf16.msra.mxu1 %v710_v6 }
  0x3b   : > { %p911_p9 = pnand %p910_p8, %p906_p5 }
  0x3d   : > { %476 = vmatpush.bf16.msra.mxu2 %v718_v14 }
  0x3e   : > { %390 = vmatpush.bf16.msra.mxu1 %v709_v7 }
  0x41   : > { %477 = vmatpush.bf16.msra.mxu2 %v717_v15 }
  0x42   : > { %391 = vmatpush.bf16.msra.mxu1 %v708_v8 }
  0x45   : > { %478 = vmatpush.bf16.msra.mxu2 %v716_v16 }
  0x46   : > { %392 = vmatpush.bf16.msra.mxu1 %v707_v9 }
  0x49   : > { %479 = vmatpush.bf16.msra.mxu2 %v715_v17 }
  0x4a   : > { %393 = vmatpush.bf16.msra.mxu1 %v706_v10 }
  0x4d   : > { %480 = vmatpush.bf16.msra.mxu2 %v714_v24 }
  0x4e   : > { %394 = vmatpush.bf16.msra.mxu1 %v705_v11 }
  0x51   : > { %481 = vmatpush.bf16.msra.mxu2 %v713_v25 }
  0xb5   : > { %v311_v19 = vpop.f32.mrf.mxu0 }
  0xb6   : > { %v312_v20 = vadd.f32 %v790_v18, %v311_v19 }
  0xb8   : > { %v315_v21 = vmax.f32 %v312_v20, 0.0 }
  0xba   : > { %v335_v22 = vpack.c.bf16 %v315_v21, %v315_v21 }
  0xbc   : > { %395 = vmatmul.bf16.vlgmr.msra.gmra.mxu1 %v335_v22 }
  0xbd   : > { %v313_v23 = vpop.f32.mrf.mxu0 }
 0x139   : > { %v396_v27 = vpop.f32.mrf.mxu1 }
 0x13a   : > { %v397_v28 = vadd.f32 %v791_v26, %v396_v27 }
 0x13c   : > { %v400_v29 = vmax.f32 %v397_v28, 0.0 }
 0x13e   : > { %v422_v30 = vpack.c.bf16 %v400_v29, %v400_v29 }
 0x140   : > { %482 = vmatmul.bf16.vlgmr.msra.gmra.mxu2 %v422_v30 }
 0x141   : > { %v398_v31 = vpop.f32.mrf.mxu1 }
 0x1c3   : > { %v483_v33 = vpop.f32.mrf.mxu2 }
 0x1c4   : > { %v484_v34 = vadd.f32 %v792_v32, %v483_v33 }
 0x1c6   : > { %v698_v35 = vmul.f32 -1.442695, %v484_v34 }
 0x1c8   : > { %793 = vpow2.f32 %v698_v35 }
 0x1cb   : > { %v485_v36 = vpop.f32.mrf.mxu2 }
 0x1ce   : > { %v794_v37 = vpop.eup %793 }
 0x1cf   : > { %v490_v38 = vadd.f32 1.0, %v794_v37 }
 0x1d1   : > { %795 = vrcp.f32 %v490_v38  ;;  %v502_v42 = vand.u32 2147483648, %v490_v38  ;;  %v500_v44 = vand.u32 2147483647, %v490_v38  ;;  %vm496_vm2 = vweird.f32 %v490_v38 }
 0x1d3   : > { %v503_v46 = vor.u32 1.1754944e-38, %v502_v42  ;;  %vm501_vm4 = vcmp.eq.f32.partialorder %v500_v44, 8.507059e+37 }
 0x1d7   : > { %v796_v39 = vpop.eup %795 }
 0x1d8   : > { %v492_v40 = vmul.f32 %v796_v39, %v490_v38  ;;  %vm497_vm1 = vweird.f32 %v796_v39 }
 0x1d9   : > { %vm498_vm3 = vmor %vm496_vm2, %vm497_vm1 }
 0x1da   : > { %v493_v41 = vsub.f32 1.0, %v492_v40 }
 0x1dc   : > { %v494_v43 = vmul.f32 %v796_v39, %v493_v41 }
 0x1de   : > { %v495_v45 = vadd.f32 %v796_v39, %v494_v43 }
 0x1e0   : > { %v499_v47 = vsel %vm498_vm3, %v796_v39, %v495_v45 }
 0x1e1   : > { %v504_v48 = vsel %vm501_vm4, %v503_v46, %v499_v47 }
 0x1e2   : > { %506 = vst [vmem:[%s274_s30] sm:$0xff] %v504_v48 }
 0x1e3   : > { %914 = shalt.err (!%p911_p9)
}
 0x1e4   : > { %731 = dma.vmem_to_hbm [thread:$0]  (%p1062_p4), %s521_s16, 128, %s523_s7, %s508_s25  }
 0x1e5 PF: > { %s534_s22 = sand.u32 1, %s945_s18   ;;  %p1163_p10 = scmp.ge.s32.totalorder %s957_s21, 2 }
 0x1e6   : > { %s535_s11 = scalar_lea.sflag [#allocation5], %s534_s22 }
 0x1e7   : > { %p745_p13 = pnand %p1163_p10, %p1066_p6 }
 0x1e9   : > { %p746_p11 = pneg %p745_p13 }
 0x1eb   : > { %940 = dma.done.wait (%p746_p11), %s535_s11, 128  }
 0x1ec   : > { %942 = vsyncadd (%p746_p11), %s535_s11, 4294967168  ;;  %p19_p0 = scmp.ge.s32.totalorder %s1036_s12, 4   ;;  %s1164_s18 = smov %s949_s19 }
 0x1ed   : > { %s1165_s19 = smov %s953_s20  ;;  %s1166_s20 = smov %s1047_s15 }
 0x1ee   : > { %s1167_s21 = smov %s1036_s12  ;;  %21 = sbr.rel (!%p19_p0) target bundleno = 6 (0x6), region = 95 }
 0x1f3   :  { %541 = vsyncpa [#allocation4], 1 }
 0x1f4   :  { %543 = vsyncpa [#allocation4 + $0x1], 1 }
 0x1f5   :  { %544 = vsyncpa [#allocation7], 1 }
 0x1f6   :  { %545 = vsyncpa [#allocation5], 1 }
 0x1f7   :  { %547 = vsyncpa [#allocation5 + $0x1], 1 }

// kernel: tpu_custom_call.1
= control target key start
LH: loop header
LB: loop body
LE: loop exit
PB: predicated region body
PF: predicated region fallthrough
CT: control target
= control target key end

     0   :  { %10 = vsyncpa [#allocation4], 0  ;;  %s1151_s0 = inlined_call_operand.hbm [shape: f32[16,32], index: 0, kind: input, shape index: {}]   ;;  %s1152_s1 = inlined_call_operand.hbm [shape: bf16[32,128], index: 1, kind: input, shape index: {}]   ;;  %s1153_s2 = inlined_call_operand.vmem [shape: f32[1,128], index: 2, kind: input, shape index: {}]   ;;  %s1154_s3 = inlined_call_operand.hbm [shape: bf16[2,128,128], index: 3, kind: input, shape index: {}]   ;;  %s1155_s4 = inlined_call_operand.vmem [shape: f32[2,1,128], index: 4, kind: input, shape index: {}]   ;;  %s1156_s5 = inlined_call_operand.hbm [shape: f32[16,128], index: 5, kind: output, shape index: {}]  }
   0x1   :  { %12 = vsyncpa [#allocation4 + $0x1], 0 }
   0x2   :  { %13 = vsyncpa [#allocation7], 0 }
   0x3   :  { %14 = vsyncpa [#allocation5], 0 }
   0x4   :  { %16 = vsyncpa [#allocation5 + $0x1], 0  ;;  %s993_s18 = smov 0   ;;  %s995_s19 = smov 0  }
   0x5   :  { %s997_s20 = smov 0   ;;  %s999_s21 = smov 0  }
   0x6 LB: > { %s174_s24 = sshll.u32 %s1152_s1, 4  ;;  %s1017_s25 = sadd.s32 4294967295, %s957_s21   ;;  %s957_s21 = sphi %s999_s21, %s1167_s21   ;;  %s953_s20 = sphi %s997_s20, %s1166_s20   ;;  %s949_s19 = sphi %s995_s19, %s1165_s19   ;;  %s945_s18 = sphi %s993_s18, %s1164_s18   ;;  %s175_s24 = int_to_ptr.hbm [resolvable:$true] %s174_s24 }
   0x7   : > { %p613_p0 = scmp.ge.s32.totalorder %s957_s21, 1  ;;  %p43_p1 = scmp.eq.s32.totalorder %s1017_s25, 0 }
   0x8   : > { %p163_p2 = scmp.lt.s32.totalorder %s957_s21, 3  ;;  %s959_s27 = smov [#allocation6]  }
   0x9   : > { %s176_s28 = sshll.u32 %s959_s27, 4  ;;  %s191_s6 = sshll.u32 %s1154_s3, 4  ;;  %s177_s28 = int_to_ptr.vmem [resolvable:$true] %s176_s28  ;;  %s192_s6 = int_to_ptr.hbm [resolvable:$true] %s191_s6 }
   0xa   : > { %p1022_p3 = pnand %p613_p0, %p163_p2  ;;  %s960_s7 = smov [#allocation8]  }
   0xb   : > { %s193_s8 = sshll.u32 %s960_s7, 4  ;;  %s961_s9 = smov 64   ;;  %s194_s8 = int_to_ptr.vmem [resolvable:$true] %s193_s8 }
   0xc   : > { %p733_p4 = pneg %p1022_p3  ;;  %s962_s10 = smov 4  }
   0xd   : > { %s612_s11 = sadd.s32 4294967294, %s957_s21   ;;  %s1036_s12 = sadd.s32 1, %s957_s21  }
   0xe   : > { %p734_p6 = pnand %p733_p4, %p43_p1  ;;  %s26_s13 = ssub.s32 %s957_s21, %s1036_s12 }
   0xf   : > { %s29_s14 = sadd.s32 1, %s953_s20  ;;  %p27_p7 = scmp.eq.s32.totalorder %s26_s13, 0 }
  0x10   : > { %736 = dma.hbm_to_vmem [thread:$0]  (!%p734_p6), %s175_s24, 256, %s177_s28, [#allocation7], %s961_s9, %s961_s9, %s962_s10  }
  0x11   : > { %739 = dma.hbm_to_vmem [thread:$0]  (!%p734_p6), %s192_s6, 2048, %s194_s8, [#allocation7], %s961_s9, %s961_s9, %s962_s10  }
  0x12   : > { %p36_p8 = scmp.ne.s32.totalorder %s953_s20, %s949_s19  ;;  %p37_p9 = scmp.eq.s32.totalorder %s957_s21, 0 }
  0x13   : > { %p42_p10 = scmp.ne.s32.totalorder %s949_s19, %s945_s18  ;;  %p150_p13 = scmp.eq.s32.totalorder %s1017_s25, 1 }
  0x14   : > { %s1047_s15 = scalar_select %p27_p7, %s953_s20, %s29_s14  }
  0x15   : > { %p1049_p11 = por %p37_p9, %p36_p8  ;;  %p1055_p12 = por %p43_p1, %p42_p10 }
  0x16   : > { %p156_p0 = scmp.eq.s32.totalorder %s612_s11, 1  ;;  %p750_p2 = scmp.lt.s32.totalorder %s957_s21, 2 }
  0x17   : > { %s210_s22 = sand.u32 1, %s953_s20   ;;  %p1062_p4 = por %p150_p13, %p36_p8 }
  0x18   : > { %p1066_p6 = por %p156_p0, %p42_p10  ;;  %s617_s27 = sshll.u32 %s210_s22, 3 }
  0x19   : > { %s618_s28 = sshll.u32 %s957_s21, 3  ;;  %s214_s7 = scalar_lea.vmem [#allocation3], %s617_s27 }
  0x1a   : > { %s218_s6 = scalar_lea.hbm %s1151_s0, %s618_s28  ;;  %s222_s8 = sshll.u32 %s214_s7, 4  ;;  %s223_s8 = int_to_ptr.vmem [resolvable:$true] %s222_s8 }
  0x1b   : > { %s220_s9 = sshll.u32 %s218_s6, 4  ;;  %p1076_p7 = pnand %p750_p2, %p1049_p11  ;;  %s221_s9 = int_to_ptr.hbm [resolvable:$true] %s220_s9 }
  0x1c   : > { %s211_s11 = scalar_lea.sflag [#allocation4], %s210_s22  ;;  %s857_s13 = sshra.s32 %s221_s9, 4  ;;  %s858_s13 = int_to_ptr.hbm [resolvable:$true] %s857_s13 }
  0x1d   : > { %s859_s14 = scalar_lea.hbm %s858_s13, 8  ;;  %p861_p9 = pneg %p1076_p7 }
  0x1e   : > { %p860_p8 = scmp.ne.s32.totalorder %s858_s13, %s859_s14  ;;  %s864_s29 = scalar_lea.hbm %s1151_s0, 16 }
  0x1f   : > { %p865_p11 = scmp.lt.s32.totalorder %s858_s13, %s1151_s0  ;;  %p866_p0 = scmp.lt.s32.totalorder %s864_s29, %s859_s14 }
  0x20   : > { %p862_p10 = pnand %p861_p9, %p860_p8 }
  0x21   : > { %p867_p2 = por %p866_p0, %p865_p11 }
  0x22   : > { %p863_p13 = pneg %p862_p10 }
  0x24   : > { %p868_p5 = pnand %p867_p2, %p863_p13 }
  0x26   : > { %871 = shalt.err (!%p868_p5)
}
  0x27   : > { %743 = dma.hbm_to_vmem [thread:$0]  (!%p1076_p7), %s221_s9, 128, %s223_s8, %s211_s11  }
  0x28   : > { %231 = sbr.rel (%p1022_p3) target bundleno = 485 (0x1e5), region = 40  ;;  %s1093_s22 = sand.u32 (!%p1022_p3), 1, %s949_s19  }
  0x29   : > { %s620_s6 = sshll.u32 (!%p1022_p3), %s1093_s22, 3  ;;  %s234_s7 = scalar_lea.sflag (!%p1022_p3), [#allocation4], %s1093_s22 }
  0x2a   : > { %s237_s13 = scalar_lea.vmem (!%p1022_p3), [#allocation3], %s620_s6 }
  0x2d   : > { %932 = dma.done.wait (%p1055_p12), %s234_s7, 128  }
  0x2e   : > { %934 = vsyncadd (%p1055_p12), %s234_s7, 4294967168 }
  0x2f   : > { %936 = dma.done.wait (%p43_p1), [#allocation7], 2304  }
  0x30   : > { %938 = vsyncadd (%p43_p1), [#allocation7], 4294964992  ;;  %v704_v0 = vld [vmem:[#allocation6 + $0x8] sm:$0xff]  ;;  %v703_v2 = vld [vmem:[#allocation6] sm:$0xff]  ;;  %vm298_vm0 = vcmask 261120   ;;  %s700_s14 = sshll.u32 %s1017_s25, 3 }
  0x31   : > { %v712_v1 = vld [vmem:[#allocation8 + $0x38] sm:$0xff]  ;;  %308 = vmatpush.bf16.msra.mxu0 %v704_v0  ;;  %v276_v3 = vld [vmem:[%s237_s13] sm:$0xff]  ;;  %v711_v4 = vld [vmem:[#allocation8 + $0x30] sm:$0xff]  ;;  %s518_s29 = scalar_lea.hbm %s1156_s5, %s700_s14  ;;  %s274_s30 = scalar_lea.vmem [#allocation9], %s620_s6 }
  0x32   : > { %387 = vmatpush.bf16.msra.mxu1 %v712_v1  ;;  %v277_v5 = vpack.c.bf16 %v276_v3, %v276_v3  ;;  %v710_v6 = vld [vmem:[#allocation8 + $0x28] sm:$0xff]  ;;  %v709_v7 = vld [vmem:[#allocation8 + $0x20] sm:$0xff]  ;;  %v708_v8 = vld [vmem:[#allocation8 + $0x18] sm:$0xff]  ;;  %s520_s16 = sshll.u32 %s274_s30, 4  ;;  %s522_s7 = sshll.u32 %s518_s29, 4  ;;  %s521_s16 = int_to_ptr.vmem [resolvable:$true] %s520_s16  ;;  %s523_s7 = int_to_ptr.hbm [resolvable:$true] %s522_s7 }
  0x33   : > { %v707_v9 = vld [vmem:[#allocation8 + $0x10] sm:$0xff]  ;;  %v706_v10 = vld [vmem:[#allocation8 + $0x8] sm:$0xff]  ;;  %v705_v11 = vld [vmem:[#allocation8] sm:$0xff]  ;;  %s508_s25 = scalar_lea.sflag [#allocation5], %s1093_s22  ;;  %s901_s13 = sshra.s32 %s523_s7, 4  ;;  %s902_s13 = int_to_ptr.hbm [resolvable:$true] %s901_s13 }
  0x34   : > { %v720_v12 = vld [vmem:[#allocation8 + $0x78] sm:$0xff]  ;;  %v719_v13 = vld [vmem:[#allocation8 + $0x70] sm:$0xff]  ;;  %v718_v14 = vld [vmem:[#allocation8 + $0x68] sm:$0xff]  ;;  %s903_s26 = scalar_lea.hbm %s902_s13, 8  ;;  %s907_s8 = scalar_lea.hbm %s1156_s5, 16 }
  0x35   : > { %309 = vmatpush.bf16.msra.mxu0 %v703_v2  ;;  %474 = vmatpush.bf16.msra.mxu2 %v720_v12  ;;  %v717_v15 = vld [vmem:[#allocation8 + $0x60] sm:$0xff]  ;;  %v716_v16 = vld [vmem:[#allocation8 + $0x58] sm:$0xff]  ;;  %v715_v17 = vld [vmem:[#allocation8 + $0x50] sm:$0xff]  ;;  %p904_p1 = scmp.ne.s32.totalorder %s902_s13, %s903_s26  ;;  %p908_p12 = scmp.lt.s32.totalorder %s902_s13, %s1156_s5 }
  0x36   : > { %388 = vmatpush.bf16.msra.mxu1 %v711_v4  ;;  %v790_v18 = vld [vmem:[%s1153_s2] ss:$0 sm:$0xff]  ;;  %v714_v24 = vld [vmem:[#allocation8 + $0x48] sm:$0xff]  ;;  %v792_v32 = vld [vmem:[%s1155_s4 + $0x1] ss:$0 sm:$0xff]  ;;  %p909_p7 = scmp.lt.s32.totalorder %s907_s8, %s903_s26 }
  0x37   : > { %v713_v25 = vld [vmem:[#allocation8 + $0x40] sm:$0xff]  ;;  %p905_p3 = pnand %p904_p1, %p1062_p4 }
  0x38   : > { %632 = vmatmul.msk.bf16.vlgmr.msra.gmra.mxu0 %vm298_vm0, %v277_v5  ;;  %v791_v26 = vld [vmem:[%s1155_s4] ss:$0 sm:$0xff]  ;;  %p910_p8 = por %p909_p7, %p908_p12 }
  0x39   : > { %475 = vmatpush.bf16.msra.mxu2 %v719_v13  ;;  %p906_p5 = pneg %p905_p3 }
  0x3a   : > { %389 = vmatpush.bf16.msra.mxu1 %v710_v6 }
  0x3b   : > { %p911_p9 = pnand %p910_p8, %p906_p5 }
  0x3d   : > { %476 = vmatpush.bf16.msra.mxu2 %v718_v14 }
  0x3e   : > { %390 = vmatpush.bf16.msra.mxu1 %v709_v7 }
  0x41   : > { %477 = vmatpush.bf16.msra.mxu2 %v717_v15 }
  0x42   : > { %391 = vmatpush.bf16.msra.mxu1 %v708_v8 }
  0x45   : > { %478 = vmatpush.bf16.msra.mxu2 %v716_v16 }
  0x46   : > { %392 = vmatpush.bf16.msra.mxu1 %v707_v9 }
  0x49   : > { %479 = vmatpush.bf16.msra.mxu2 %v715_v17 }
  0x4a   : > { %393 = vmatpush.bf16.msra.mxu1 %v706_v10 }
  0x4d   : > { %480 = vmatpush.bf16.msra.mxu2 %v714_v24 }
  0x4e   : > { %394 = vmatpush.bf16.msra.mxu1 %v705_v11 }
  0x51   : > { %481 = vmatpush.bf16.msra.mxu2 %v713_v25 }
  0xb5   : > { %v311_v19 = vpop.f32.mrf.mxu0 }
  0xb6   : > { %v312_v20 = vadd.f32 %v790_v18, %v311_v19 }
  0xb8   : > { %v315_v21 = vmax.f32 %v312_v20, 0.0 }
  0xba   : > { %v335_v22 = vpack.c.bf16 %v315_v21, %v315_v21 }
  0xbc   : > { %395 = vmatmul.bf16.vlgmr.msra.gmra.mxu1 %v335_v22 }
  0xbd   : > { %v313_v23 = vpop.f32.mrf.mxu0 }
 0x139   : > { %v396_v27 = vpop.f32.mrf.mxu1 }
 0x13a   : > { %v397_v28 = vadd.f32 %v791_v26, %v396_v27 }
 0x13c   : > { %v400_v29 = vmax.f32 %v397_v28, 0.0 }
 0x13e   : > { %v422_v30 = vpack.c.bf16 %v400_v29, %v400_v29 }
 0x140   : > { %482 = vmatmul.bf16.vlgmr.msra.gmra.mxu2 %v422_v30 }
 0x141   : > { %v398_v31 = vpop.f32.mrf.mxu1 }
 0x1c3   : > { %v483_v33 = vpop.f32.mrf.mxu2 }
 0x1c4   : > { %v484_v34 = vadd.f32 %v792_v32, %v483_v33 }
 0x1c6   : > { %v698_v35 = vmul.f32 -1.442695, %v484_v34 }
 0x1c8   : > { %793 = vpow2.f32 %v698_v35 }
 0x1cb   : > { %v485_v36 = vpop.f32.mrf.mxu2 }
 0x1ce   : > { %v794_v37 = vpop.eup %793 }
 0x1cf   : > { %v490_v38 = vadd.f32 1.0, %v794_v37 }
 0x1d1   : > { %795 = vrcp.f32 %v490_v38  ;;  %v502_v42 = vand.u32 2147483648, %v490_v38  ;;  %v500_v44 = vand.u32 2147483647, %v490_v38  ;;  %vm496_vm2 = vweird.f32 %v490_v38 }
 0x1d3   : > { %v503_v46 = vor.u32 1.1754944e-38, %v502_v42  ;;  %vm501_vm4 = vcmp.eq.f32.partialorder %v500_v44, 8.507059e+37 }
 0x1d7   : > { %v796_v39 = vpop.eup %795 }
 0x1d8   : > { %v492_v40 = vmul.f32 %v796_v39, %v490_v38  ;;  %vm497_vm1 = vweird.f32 %v796_v39 }
 0x1d9   : > { %vm498_vm3 = vmor %vm496_vm2, %vm497_vm1 }
 0x1da   : > { %v493_v41 = vsub.f32 1.0, %v492_v40 }
 0x1dc   : > { %v494_v43 = vmul.f32 %v796_v39, %v493_v41 }
 0x1de   : > { %v495_v45 = vadd.f32 %v796_v39, %v494_v43 }
 0x1e0   : > { %v499_v47 = vsel %vm498_vm3, %v796_v39, %v495_v45 }
 0x1e1   : > { %v504_v48 = vsel %vm501_vm4, %v503_v46, %v499_v47 }
 0x1e2   : > { %506 = vst [vmem:[%s274_s30] sm:$0xff] %v504_v48 }
 0x1e3   : > { %914 = shalt.err (!%p911_p9)
}
 0x1e4   : > { %731 = dma.vmem_to_hbm [thread:$0]  (%p1062_p4), %s521_s16, 128, %s523_s7, %s508_s25  }
 0x1e5 PF: > { %s534_s22 = sand.u32 1, %s945_s18   ;;  %p1163_p10 = scmp.ge.s32.totalorder %s957_s21, 2 }
 0x1e6   : > { %s535_s11 = scalar_lea.sflag [#allocation5], %s534_s22 }
 0x1e7   : > { %p745_p13 = pnand %p1163_p10, %p1066_p6 }
 0x1e9   : > { %p746_p11 = pneg %p745_p13 }
 0x1eb   : > { %940 = dma.done.wait (%p746_p11), %s535_s11, 128  }
 0x1ec   : > { %942 = vsyncadd (%p746_p11), %s535_s11, 4294967168  ;;  %p19_p0 = scmp.ge.s32.totalorder %s1036_s12, 4   ;;  %s1164_s18 = smov %s949_s19 }
 0x1ed   : > { %s1165_s19 = smov %s953_s20  ;;  %s1166_s20 = smov %s1047_s15 }
 0x1ee   : > { %s1167_s21 = smov %s1036_s12  ;;  %21 = sbr.rel (!%p19_p0) target bundleno = 6 (0x6), region = 95 }
 0x1f3   :  { %541 = vsyncpa [#allocation4], 1 }
 0x1f4   :  { %543 = vsyncpa [#allocation4 + $0x1], 1 }
 0x1f5   :  { %544 = vsyncpa [#allocation7], 1 }
 0x1f6   :  { %545 = vsyncpa [#allocation5], 1 }
 0x1f7   :  { %547 = vsyncpa [#allocation5 + $0x1], 1 }

</bundles_post_ra>
